<compile_context>
chip_gen: v7x
topology: tpu7x:2x2x1
jax: 0.10.0
libtpu: 0.0.40
codegen_flags: <defaults>
</compile_context>

<pallas_src>
import math

import jax
import jax.numpy as jnp
from jax.experimental import pallas as pl
from jax.experimental.pallas import tpu as pltpu


# ----------------------------------------------------------------------------
# Generation-aware scoped-VMEM budget
# ----------------------------------------------------------------------------
def _vmem_limit_bytes():
    # Conservative fallback assumes a 64 MiB VMEM part (v7x-class) so the
    # requested limit is always <= physical capacity on every generation.
    phys = 64 * 1024 * 1024
    try:
        info = pltpu.get_tpu_info()
        phys = int(getattr(info, "vmem_capacity_bytes", phys)) or phys
    except Exception:
        pass
    # ~48 MiB on 64 MiB parts (v7x), ~96 MiB on 128 MiB parts (v5e/v6e).
    return int(min(96 * 1024 * 1024, phys * 3 // 4))


_VMEM_LIMIT_BYTES = _vmem_limit_bytes()

# Recurrent time-loop controls.
_STATIC_UNROLL_MAX = 16   # fully unroll in Python up to this many steps
_FORI_UNROLL = 8          # partial unroll for larger chunks (bounds vreg pressure)


def _pick_row_tile(rows, stream_bytes_per_row,
                   preferred=(1024, 512, 256, 128, 64, 32, 16, 8)):
    """Largest row tile from `preferred` that divides `rows` and whose
    double-buffered streamed tiles fit comfortably in the VMEM budget."""
    budget = _VMEM_LIMIT_BYTES // 2
    for t in preferred:
        if rows % t == 0 and 2 * t * stream_bytes_per_row <= budget:
            return t
    # Fallback: one block.  TODO(synk): pad rows to a friendly multiple at
    # production sizes instead of relying on this fallback.
    return rows


def _pick_time_chunk(seq_len, max_chunk):
    """Largest T <= max_chunk that divides seq_len."""
    for t in range(min(seq_len, max_chunk), 0, -1):
        if seq_len % t == 0:
            return t
    return 1


# ----------------------------------------------------------------------------
# Layer-0 projection: LayerNorm fused under the two hoisted input-side GEMMs.
#   gi_dir = LN(x) @ Wi_dir + folded_bias_dir     (both directions, one call)
# x arrives bf16, LN statistics are computed in f32, dots run bf16 on the MXU
# with f32 accumulation, outputs are stored bf16.
# ----------------------------------------------------------------------------
def _ln_proj1_kernel(x_ref, g_ref, b_ref, wf_ref, wb_ref, bf_ref, bb_ref,
                     gif_ref, gib_ref):
    x = x_ref[...].astype(jnp.float32)                 # (TM, E)
    mu = jnp.mean(x, axis=-1, keepdims=True)
    var = jnp.mean(jnp.square(x - mu), axis=-1, keepdims=True)
    xn = ((x - mu) * jax.lax.rsqrt(var + 1e-12) * g_ref[...]
          + b_ref[...]).astype(jnp.bfloat16)
    gif_ref[...] = (jnp.dot(xn, wf_ref[...], preferred_element_type=jnp.float32)
                    + bf_ref[...]).astype(gif_ref.dtype)
    gib_ref[...] = (jnp.dot(xn, wb_ref[...], preferred_element_type=jnp.float32)
                    + bb_ref[...]).astype(gib_ref.dtype)


def gru_input_proj_first(x2d, ln_g, ln_b, wi_f, wi_b, bi_f, bi_b):
    rows, E = x2d.shape
    threeH = wi_f.shape[1]
    # Streamed bytes per row: bf16 x tile + two bf16 gi tiles.
    tm = _pick_row_tile(rows, 2 * E + 2 * 2 * threeH)
    row = lambda r: (r, 0)
    const = lambda r: (0, 0)
    return pl.pallas_call(
        _ln_proj1_kernel,
        grid=(rows // tm,),
        in_specs=[pl.BlockSpec((tm, E), row),
                  pl.BlockSpec((1, E), const),
                  pl.BlockSpec((1, E), const),
                  pl.BlockSpec((E, threeH), const),
                  pl.BlockSpec((E, threeH), const),
                  pl.BlockSpec((1, threeH), const),
                  pl.BlockSpec((1, threeH), const)],
        out_specs=(pl.BlockSpec((tm, threeH), row),
                   pl.BlockSpec((tm, threeH), row)),
        out_shape=(jax.ShapeDtypeStruct((rows, threeH), jnp.bfloat16),
                   jax.ShapeDtypeStruct((rows, threeH), jnp.bfloat16)),
        compiler_params=pltpu.CompilerParams(
            dimension_semantics=("parallel",),
            vmem_limit_bytes=_VMEM_LIMIT_BYTES),
    )(x2d, ln_g, ln_b, wi_f, wi_b, bi_f, bi_b)


# ----------------------------------------------------------------------------
# Layer >0 projection: previous layer's two direction outputs (already bf16)
# feed two partial GEMMs per direction; the (B*S, 2H) concat is never built.
# ----------------------------------------------------------------------------
def _proj2_kernel(xf_ref, xb_ref, wff_ref, wbf_ref, wfb_ref, wbb_ref,
                  bf_ref, bb_ref, gif_ref, gib_ref):
    xf = xf_ref[...]                                   # bf16, no in-kernel cast
    xb = xb_ref[...]
    gif_ref[...] = (jnp.dot(xf, wff_ref[...], preferred_element_type=jnp.float32)
                    + jnp.dot(xb, wbf_ref[...], preferred_element_type=jnp.float32)
                    + bf_ref[...]).astype(gif_ref.dtype)
    gib_ref[...] = (jnp.dot(xf, wfb_ref[...], preferred_element_type=jnp.float32)
                    + jnp.dot(xb, wbb_ref[...], preferred_element_type=jnp.float32)
                    + bb_ref[...]).astype(gib_ref.dtype)


def gru_input_proj_next(xf2d, xb2d, w_ff, w_bf, w_fb, w_bb, bi_f, bi_b):
    rows, H = xf2d.shape
    threeH = w_ff.shape[1]
    tm = _pick_row_tile(rows, 2 * 2 * H + 2 * 2 * threeH)
    row = lambda r: (r, 0)
    const = lambda r: (0, 0)
    return pl.pallas_call(
        _proj2_kernel,
        grid=(rows // tm,),
        in_specs=[pl.BlockSpec((tm, H), row),
                  pl.BlockSpec((tm, H), row),
                  pl.BlockSpec((H, threeH), const),
                  pl.BlockSpec((H, threeH), const),
                  pl.BlockSpec((H, threeH), const),
                  pl.BlockSpec((H, threeH), const),
                  pl.BlockSpec((1, threeH), const),
                  pl.BlockSpec((1, threeH), const)],
        out_specs=(pl.BlockSpec((tm, threeH), row),
                   pl.BlockSpec((tm, threeH), row)),
        out_shape=(jax.ShapeDtypeStruct((rows, threeH), jnp.bfloat16),
                   jax.ShapeDtypeStruct((rows, threeH), jnp.bfloat16)),
        compiler_params=pltpu.CompilerParams(
            dimension_semantics=("parallel",),
            vmem_limit_bytes=_VMEM_LIMIT_BYTES),
    )(xf2d, xb2d, w_ff, w_bf, w_fb, w_bb, bi_f, bi_b)


# ----------------------------------------------------------------------------
# Fused bidirectional GRU recurrence, batch-major, chunked over time.
# PyTorch gate equations (gate order r, z, n), input-side gi precomputed:
#   r = sigmoid(gi_r + h Whr)            (bi_r + bh_r folded into gi_r)
#   z = sigmoid(gi_z + h Whz)            (bi_z + bh_z folded into gi_z)
#   n = tanh   (gi_n + r * (h Whn + bhn))
#   h = (1 - z) * n + z * h
# Grid iterates over S/T time chunks; forward walks chunk c front-to-back,
# backward walks chunk (nc-1-c) back-to-front.  Hidden states stay in VMEM
# scratch in f32; the tiny per-step dot runs bf16 x bf16 on the MXU.
# ----------------------------------------------------------------------------
def _gru_step(gi, h, wh, bhn, H):
    gi = gi.astype(jnp.float32)
    gh = jnp.dot(h.astype(jnp.bfloat16), wh, preferred_element_type=jnp.float32)
    r = jax.nn.sigmoid(gi[:, :H] + gh[:, :H])
    z = jax.nn.sigmoid(gi[:, H:2 * H] + gh[:, H:2 * H])
    n = jnp.tanh(gi[:, 2 * H:] + r * (gh[:, 2 * H:] + bhn))
    return (1.0 - z) * n + z * h


# TODO(synk): at production sizes keep H a multiple of 128 and B a multiple of
# 8 so the r/z/n lane slices and the per-step output stores are lane/sublane
# dense (demo shapes below are tiny and run on full-array blocks).
# TODO(synk): on v7x, split the two directions across the 2 TensorCores with a
# leading parallel grid axis (or pl.core_map); kept fused here for 1-TC chips.
def _bigru_seq_kernel(gif_ref, gib_ref, whf_ref, whb_ref, bhnf_ref, bhnb_ref,
                      outf_ref, outb_ref, hf_scr, hb_scr):
    c = pl.program_id(0)
    T = gif_ref.shape[1]
    H = hf_scr.shape[-1]

    @pl.when(c == 0)
    def _():
        hf_scr[...] = jnp.zeros_like(hf_scr)   # h0 = 0 (PyTorch default)
        hb_scr[...] = jnp.zeros_like(hb_scr)

    whf = whf_ref[...]
    whb = whb_ref[...]
    bhnf = bhnf_ref[...]
    bhnb = bhnb_ref[...]

    hf = hf_scr[...]
    hb = hb_scr[...]
    if T <= _STATIC_UNROLL_MAX:
        # Fully unrolled static time loop (small T): maximal LLO visibility.
        for i in range(T):
            j = T - 1 - i
            hf = _gru_step(gif_ref[:, i, :], hf, whf, bhnf, H)
            outf_ref[:, i, :] = hf.astype(outf_ref.dtype)
            hb = _gru_step(gib_ref[:, j, :], hb, whb, bhnb, H)
            outb_ref[:, j, :] = hb.astype(outb_ref.dtype)
    else:
        # Partially unrolled fori_loop (large T): amortizes grid overhead
        # without blowing up vreg live ranges.
        def body(i, carry):
            hf, hb = carry
            j = T - 1 - i
            gif = gif_ref[:, pl.ds(i, 1), :][:, 0, :]
            hf = _gru_step(gif, hf, whf, bhnf, H)
            outf_ref[:, pl.ds(i, 1), :] = hf.astype(outf_ref.dtype)[:, None, :]
            gib = gib_ref[:, pl.ds(j, 1), :][:, 0, :]
            hb = _gru_step(gib, hb, whb, bhnb, H)
            outb_ref[:, pl.ds(j, 1), :] = hb.astype(outb_ref.dtype)[:, None, :]
            return hf, hb
        hf, hb = jax.lax.fori_loop(0, T, body, (hf, hb), unroll=_FORI_UNROLL)

    hf_scr[...] = hf
    hb_scr[...] = hb


def _bigru_head_kernel(gif_ref, gib_ref, whf_ref, whb_ref, bhnf_ref, bhnb_ref,
                       wof_ref, wob_ref, ob_ref, logits_ref, hf_scr, hb_scr):
    """Last GRU layer: no per-timestep outputs; the linear head is fused into
    the final-chunk epilogue (dropout on cat(h_f, h_b) is identity in eval)."""
    c = pl.program_id(0)
    T = gif_ref.shape[1]
    H = hf_scr.shape[-1]

    @pl.when(c == 0)
    def _():
        hf_scr[...] = jnp.zeros_like(hf_scr)
        hb_scr[...] = jnp.zeros_like(hb_scr)

    whf = whf_ref[...]
    whb = whb_ref[...]
    bhnf = bhnf_ref[...]
    bhnb = bhnb_ref[...]

    hf = hf_scr[...]
    hb = hb_scr[...]
    if T <= _STATIC_UNROLL_MAX:
        for i in range(T):
            j = T - 1 - i
            hf = _gru_step(gif_ref[:, i, :], hf, whf, bhnf, H)
            hb = _gru_step(gib_ref[:, j, :], hb, whb, bhnb, H)
    else:
        def body(i, carry):
            hf, hb = carry
            j = T - 1 - i
            gif = gif_ref[:, pl.ds(i, 1), :][:, 0, :]
            gib = gib_ref[:, pl.ds(j, 1), :][:, 0, :]
            hf = _gru_step(gif, hf, whf, bhnf, H)
            hb = _gru_step(gib, hb, whb, bhnb, H)
            return hf, hb
        hf, hb = jax.lax.fori_loop(0, T, body, (hf, hb), unroll=_FORI_UNROLL)

    hf_scr[...] = hf
    hb_scr[...] = hb

    # logits = [h_f | h_b] @ out_w + out_b, computed without materializing the
    # concat; only valid (and only stored) after the last time chunk.
    @pl.when(c == pl.num_programs(0) - 1)
    def _():
        logits_ref[...] = (
            jnp.dot(hf, wof_ref[...], preferred_element_type=jnp.float32)
            + jnp.dot(hb, wob_ref[...], preferred_element_type=jnp.float32)
            + ob_ref[...])


def bigru_layer_seq(gi_f, gi_b, wh_f, wh_b, bhn_f, bhn_b, time_chunk=32):
    """Non-final layer: gi_* (B,S,3H) bf16 -> out_f/out_b (B,S,H) bf16."""
    B, S, threeH = gi_f.shape
    H = threeH // 3
    T = _pick_time_chunk(S, time_chunk)
    nc = S // T
    const = lambda c: (0, 0)
    fwd = lambda c: (0, c, 0)
    bwd = lambda c: (0, nc - 1 - c, 0)
    return pl.pallas_call(
        _bigru_seq_kernel,
        grid=(nc,),
        in_specs=[
            pl.BlockSpec((B, T, threeH), fwd),   # forward gi chunk
            pl.BlockSpec((B, T, threeH), bwd),   # backward gi chunk (reversed order)
            pl.BlockSpec((H, threeH), const),
            pl.BlockSpec((H, threeH), const),
            pl.BlockSpec((1, H), const),
            pl.BlockSpec((1, H), const),
        ],
        out_specs=(pl.BlockSpec((B, T, H), fwd),
                   pl.BlockSpec((B, T, H), bwd)),
        out_shape=(jax.ShapeDtypeStruct((B, S, H), jnp.bfloat16),
                   jax.ShapeDtypeStruct((B, S, H), jnp.bfloat16)),
        scratch_shapes=[pltpu.VMEM((B, H), jnp.float32),
                        pltpu.VMEM((B, H), jnp.float32)],
        compiler_params=pltpu.CompilerParams(
            dimension_semantics=("arbitrary",),      # sequential recurrence
            vmem_limit_bytes=_VMEM_LIMIT_BYTES),
    )(gi_f, gi_b, wh_f, wh_b, bhn_f, bhn_b)


def bigru_layer_head(gi_f, gi_b, wh_f, wh_b, bhn_f, bhn_b,
                     w_of, w_ob, out_bias, time_chunk=32):
    """Final layer: gi_* (B,S,3H) bf16 -> logits (B,O) f32 (head fused)."""
    B, S, threeH = gi_f.shape
    H = threeH // 3
    O = w_of.shape[1]
    T = _pick_time_chunk(S, time_chunk)
    nc = S // T
    const = lambda c: (0, 0)
    fwd = lambda c: (0, c, 0)
    bwd = lambda c: (0, nc - 1 - c, 0)
    return pl.pallas_call(
        _bigru_head_kernel,
        grid=(nc,),
        in_specs=[
            pl.BlockSpec((B, T, threeH), fwd),
            pl.BlockSpec((B, T, threeH), bwd),
            pl.BlockSpec((H, threeH), const),
            pl.BlockSpec((H, threeH), const),
            pl.BlockSpec((1, H), const),
            pl.BlockSpec((1, H), const),
            pl.BlockSpec((H, O), const),
            pl.BlockSpec((H, O), const),
            pl.BlockSpec((1, O), const),
        ],
        out_specs=pl.BlockSpec((B, O), const),
        out_shape=jax.ShapeDtypeStruct((B, O), jnp.float32),
        scratch_shapes=[pltpu.VMEM((B, H), jnp.float32),
                        pltpu.VMEM((B, H), jnp.float32)],
        compiler_params=pltpu.CompilerParams(
            dimension_semantics=("arbitrary",),
            vmem_limit_bytes=_VMEM_LIMIT_BYTES),
    )(gi_f, gi_b, wh_f, wh_b, bhn_f, bhn_b, w_of, w_ob, out_bias)


# ----------------------------------------------------------------------------
# Parameter construction (deterministic, synthetic), fused layout
# ----------------------------------------------------------------------------
def init_params(key, vocab_size, max_len, embed_dim, hidden_dim, output_dim, n_layers):
    keys = iter(jax.random.split(key, 64))

    def u(shape, scale):
        return jax.random.uniform(next(keys), shape, jnp.float32, -scale, scale)

    params = {
        "tok_emb": u((vocab_size, embed_dim), 0.1),
        "pos_emb": u((max_len, embed_dim), 0.1),
        "ln_g": jnp.ones((1, embed_dim), jnp.float32),
        "ln_b": jnp.zeros((1, embed_dim), jnp.float32),
    }

    H = hidden_dim
    k = 1.0 / math.sqrt(H)
    gru = []
    for layer in range(n_layers):
        in_dim = embed_dim if layer == 0 else 2 * H
        dirs = []
        for _ in range(2):  # forward, backward
            wi = u((in_dim, 3 * H), k)     # fused [Wir | Wiz | Win]
            wh = u((H, 3 * H), k)          # fused [Whr | Whz | Whn]
            bi = u((1, 3 * H), k)
            bh = u((1, 3 * H), k)
            # Fold r/z hidden biases into the input-side bias (added once in the
            # hoisted GEMM); keep bh_n separate because it is gated by r.
            bi_fold = bi + jnp.concatenate(
                [bh[:, :2 * H], jnp.zeros((1, H), jnp.float32)], axis=1)
            dirs.append({
                "wi_bf16": wi.astype(jnp.bfloat16),   # hoisted GEMM operands
                "wh_bf16": wh.astype(jnp.bfloat16),   # recurrent weights (bf16, f32 acc)
                "bi_fold": bi_fold,
                "bhn": bh[:, 2 * H:],
            })
        gru.append(dirs)
    params["gru"] = gru

    ko = 1.0 / math.sqrt(2 * H)
    out_w = u((2 * H, output_dim), ko)
    params["out_w_f"] = out_w[:H]          # rows multiplying the forward final state
    params["out_w_b"] = out_w[H:]          # rows multiplying the backward final state
    params["out_b"] = u((1, output_dim), ko)
    return params


# ----------------------------------------------------------------------------
# Full forward pass (eval mode)
# ----------------------------------------------------------------------------
def bert_gru_sentiment_forward(text, params, n_layers):
    B, S = text.shape
    E = params["tok_emb"].shape[1]
    H = params["gru"][0][0]["wh_bf16"].shape[0]

    # "BERT" last hidden state stand-in: token+position embedding lookup; the
    # LayerNorm is fused into the first projection kernel below.
    # TODO(synk): the real module wraps a pretrained BERT encoder; only its
    # (B, S, E) last-hidden-state interface is reproduced (gather done in XLA).
    emb = (params["tok_emb"][text]
           + params["pos_emb"][:S][None, :, :]).astype(jnp.bfloat16)   # (B, S, E)
    x2d = emb.reshape(B * S, E)          # batch-major flatten; no transpose needed

    out_f = out_b = logits = None
    for layer in range(n_layers):
        p_f, p_b = params["gru"][layer]
        if layer == 0:
            gi_f2d, gi_b2d = gru_input_proj_first(
                x2d, params["ln_g"], params["ln_b"],
                p_f["wi_bf16"], p_b["wi_bf16"],
                p_f["bi_fold"], p_b["bi_fold"])
        else:
            # Previous layer's direction outputs feed the next layer without
            # materializing concat(out_f, out_b).
            gi_f2d, gi_b2d = gru_input_proj_next(
                out_f.reshape(B * S, H), out_b.reshape(B * S, H),
                p_f["wi_bf16"][:H], p_f["wi_bf16"][H:],
                p_b["wi_bf16"][:H], p_b["wi_bf16"][H:],
                p_f["bi_fold"], p_b["bi_fold"])
        gi_f = gi_f2d.reshape(B, S, 3 * H)
        gi_b = gi_b2d.reshape(B, S, 3 * H)

        if layer < n_layers - 1:
            out_f, out_b = bigru_layer_seq(
                gi_f, gi_b, p_f["wh_bf16"], p_b["wh_bf16"], p_f["bhn"], p_b["bhn"])
            # inter-layer GRU dropout: identity in eval mode.
        else:
            # Last layer: per-timestep outputs are never consumed; only
            # cat(hidden[-2], hidden[-1]) -> Linear, fused into the kernel.
            logits = bigru_layer_head(
                gi_f, gi_b, p_f["wh_bf16"], p_b["wh_bf16"], p_f["bhn"], p_b["bhn"],
                params["out_w_f"], params["out_w_b"], params["out_b"])

    return logits                                                     # (B, output_dim)


if __name__ == "__main__":
    B, S = 2, 16
    VOCAB, EMBED = 50, 32                  # bert.config.hidden_size == EMBED
    HIDDEN, OUT_DIM, N_LAYERS = 16, 3, 2   # bidirectional=True, dropout eval-mode

    key = jax.random.PRNGKey(0)
    k_text, k_params = jax.random.split(key)
    text = jax.random.randint(k_text, (B, S), 0, VOCAB, dtype=jnp.int32)
    params = init_params(k_params, VOCAB, S, EMBED, HIDDEN, OUT_DIM, N_LAYERS)

    logits = bert_gru_sentiment_forward(text, params, N_LAYERS)
    jax.block_until_ready(logits)
    assert logits.shape == (B, OUT_DIM) and logits.dtype == jnp.float32
    print("KERNEL_OK")
</pallas_src>

<mosaic_0001>
module attributes {stable_mosaic.version = 11 : i64} {
  func.func @_ln_proj1_kernel(%arg0: i32, %arg1: memref<32x32xbf16, #tpu.memory_space<vmem>>, %arg2: memref<1x32xf32, #tpu.memory_space<vmem>>, %arg3: memref<1x32xf32, #tpu.memory_space<vmem>>, %arg4: memref<32x48xbf16, #tpu.memory_space<vmem>>, %arg5: memref<32x48xbf16, #tpu.memory_space<vmem>>, %arg6: memref<1x48xf32, #tpu.memory_space<vmem>>, %arg7: memref<1x48xf32, #tpu.memory_space<vmem>>, %arg8: memref<32x48xbf16, #tpu.memory_space<vmem>>, %arg9: memref<32x48xbf16, #tpu.memory_space<vmem>>) attributes {dimension_semantics = [#tpu.dimension_semantics<parallel>], iteration_bounds = array<i64: 1>, scalar_prefetch = 0 : i64, scratch_operands = 0 : i64, tpu.core_type = #tpu.core_type<tc>, window_params = [{transform_indices = @transform_0, window_bounds = array<i64: 32, 32>}, {pipeline_mode = #tpu.pipeline_mode<synchronous>, transform_indices = @transform_1, window_bounds = array<i64: 1, 32>}, {pipeline_mode = #tpu.pipeline_mode<synchronous>, transform_indices = @transform_2, window_bounds = array<i64: 1, 32>}, {pipeline_mode = #tpu.pipeline_mode<synchronous>, transform_indices = @transform_3, window_bounds = array<i64: 32, 48>}, {pipeline_mode = #tpu.pipeline_mode<synchronous>, transform_indices = @transform_4, window_bounds = array<i64: 32, 48>}, {pipeline_mode = #tpu.pipeline_mode<synchronous>, transform_indices = @transform_5, window_bounds = array<i64: 1, 48>}, {pipeline_mode = #tpu.pipeline_mode<synchronous>, transform_indices = @transform_6, window_bounds = array<i64: 1, 48>}, {transform_indices = @transform_7, window_bounds = array<i64: 32, 48>}, {transform_indices = @transform_8, window_bounds = array<i64: 32, 48>}]} {
    %c0 = arith.constant 0 : index
    %c0_0 = arith.constant 0 : index
    %0 = vector.load %arg1[%c0, %c0_0] : memref<32x32xbf16, #tpu.memory_space<vmem>>, vector<32x32xbf16>
    %1 = arith.extf %0 : vector<32x32xbf16> to vector<32x32xf32>
    %cst = arith.constant dense<0.000000e+00> : vector<32xf32>
    %2 = vector.multi_reduction <add>, %1, %cst [1] : vector<32x32xf32> to vector<32xf32>
    %3 = vector.shape_cast %2 : vector<32xf32> to vector<32x1xf32>
    %cst_1 = arith.constant 3.200000e+01 : f32
    %4 = vector.broadcast %cst_1 : f32 to vector<32x1xf32>
    %5 = arith.divf %3, %4 : vector<32x1xf32>
    %6 = vector.broadcast %5 : vector<32x1xf32> to vector<32x32xf32>
    %7 = arith.subf %1, %6 : vector<32x32xf32>
    %8 = arith.mulf %7, %7 : vector<32x32xf32>
    %cst_2 = arith.constant dense<0.000000e+00> : vector<32xf32>
    %9 = vector.multi_reduction <add>, %8, %cst_2 [1] : vector<32x32xf32> to vector<32xf32>
    %10 = vector.shape_cast %9 : vector<32xf32> to vector<32x1xf32>
    %cst_3 = arith.constant 3.200000e+01 : f32
    %11 = vector.broadcast %cst_3 : f32 to vector<32x1xf32>
    %12 = arith.divf %10, %11 : vector<32x1xf32>
    %13 = vector.broadcast %5 : vector<32x1xf32> to vector<32x32xf32>
    %14 = arith.subf %1, %13 : vector<32x32xf32>
    %cst_4 = arith.constant 9.99999996E-13 : f32
    %15 = vector.broadcast %cst_4 : f32 to vector<32x1xf32>
    %16 = arith.addf %12, %15 : vector<32x1xf32>
    %17 = math.rsqrt %16 : vector<32x1xf32>
    %18 = vector.broadcast %17 : vector<32x1xf32> to vector<32x32xf32>
    %19 = arith.mulf %14, %18 : vector<32x32xf32>
    %c0_5 = arith.constant 0 : index
    %c0_6 = arith.constant 0 : index
    %20 = vector.load %arg2[%c0_5, %c0_6] : memref<1x32xf32, #tpu.memory_space<vmem>>, vector<1x32xf32>
    %21 = vector.broadcast %20 : vector<1x32xf32> to vector<32x32xf32>
    %22 = arith.mulf %19, %21 : vector<32x32xf32>
    %c0_7 = arith.constant 0 : index
    %c0_8 = arith.constant 0 : index
    %23 = vector.load %arg3[%c0_7, %c0_8] : memref<1x32xf32, #tpu.memory_space<vmem>>, vector<1x32xf32>
    %24 = vector.broadcast %23 : vector<1x32xf32> to vector<32x32xf32>
    %25 = arith.addf %22, %24 : vector<32x32xf32>
    %26 = arith.truncf %25 : vector<32x32xf32> to vector<32x32xbf16>
    %c0_9 = arith.constant 0 : index
    %c0_10 = arith.constant 0 : index
    %27 = vector.load %arg4[%c0_9, %c0_10] : memref<32x48xbf16, #tpu.memory_space<vmem>>, vector<32x48xbf16>
    %cst_11 = arith.constant dense<0.000000e+00> : vector<32x48xf32>
    %28 = tpu.matmul %26, %27, %cst_11 {dimension_numbers = #tpu.dot_dimension_numbers<[1], [0], [0], [1], [0, 0, 1, 1], [], []>} : vector<32x32xbf16>, vector<32x48xbf16>, vector<32x48xf32> -> vector<32x48xf32>
    %c0_12 = arith.constant 0 : index
    %c0_13 = arith.constant 0 : index
    %29 = vector.load %arg6[%c0_12, %c0_13] : memref<1x48xf32, #tpu.memory_space<vmem>>, vector<1x48xf32>
    %30 = vector.broadcast %29 : vector<1x48xf32> to vector<32x48xf32>
    %31 = arith.addf %28, %30 : vector<32x48xf32>
    %32 = arith.truncf %31 : vector<32x48xf32> to vector<32x48xbf16>
    %c0_14 = arith.constant 0 : index
    %c0_15 = arith.constant 0 : index
    %33 = vector.load %arg8[%c0_14, %c0_15] : memref<32x48xbf16, #tpu.memory_space<vmem>>, vector<32x48xbf16>
    tpu.vector_store %arg8[%c0_14, %c0_15], %32 {strides = array<i32>} : memref<32x48xbf16, #tpu.memory_space<vmem>>, vector<32x48xbf16>,
    %c0_16 = arith.constant 0 : index
    %c0_17 = arith.constant 0 : index
    %34 = vector.load %arg5[%c0_16, %c0_17] : memref<32x48xbf16, #tpu.memory_space<vmem>>, vector<32x48xbf16>
    %cst_18 = arith.constant dense<0.000000e+00> : vector<32x48xf32>
    %35 = tpu.matmul %26, %34, %cst_18 {dimension_numbers = #tpu.dot_dimension_numbers<[1], [0], [0], [1], [0, 0, 1, 1], [], []>} : vector<32x32xbf16>, vector<32x48xbf16>, vector<32x48xf32> -> vector<32x48xf32>
    %c0_19 = arith.constant 0 : index
    %c0_20 = arith.constant 0 : index
    %36 = vector.load %arg7[%c0_19, %c0_20] : memref<1x48xf32, #tpu.memory_space<vmem>>, vector<1x48xf32>
    %37 = vector.broadcast %36 : vector<1x48xf32> to vector<32x48xf32>
    %38 = arith.addf %35, %37 : vector<32x48xf32>
    %39 = arith.truncf %38 : vector<32x48xf32> to vector<32x48xbf16>
    %c0_21 = arith.constant 0 : index
    %c0_22 = arith.constant 0 : index
    %40 = vector.load %arg9[%c0_21, %c0_22] : memref<32x48xbf16, #tpu.memory_space<vmem>>, vector<32x48xbf16>
    tpu.vector_store %arg9[%c0_21, %c0_22], %39 {strides = array<i32>} : memref<32x48xbf16, #tpu.memory_space<vmem>>, vector<32x48xbf16>,
    return
  }
  func.func @transform_0(%arg0: i32) -> (i32, i32) {
    %c0_i32 = arith.constant 0 : i32
    %c0_i32_0 = arith.constant 0 : i32
    return %arg0, %c0_i32 : i32, i32
  }
  func.func @transform_1(%arg0: i32) -> (i32, i32) {
    %c0_i32 = arith.constant 0 : i32
    %c0_i32_0 = arith.constant 0 : i32
    %c0_i32_1 = arith.constant 0 : i32
    return %c0_i32, %c0_i32_0 : i32, i32
  }
  func.func @transform_2(%arg0: i32) -> (i32, i32) {
    %c0_i32 = arith.constant 0 : i32
    %c0_i32_0 = arith.constant 0 : i32
    %c0_i32_1 = arith.constant 0 : i32
    return %c0_i32, %c0_i32_0 : i32, i32
  }
  func.func @transform_3(%arg0: i32) -> (i32, i32) {
    %c0_i32 = arith.constant 0 : i32
    %c0_i32_0 = arith.constant 0 : i32
    %c0_i32_1 = arith.constant 0 : i32
    return %c0_i32, %c0_i32_0 : i32, i32
  }
  func.func @transform_4(%arg0: i32) -> (i32, i32) {
    %c0_i32 = arith.constant 0 : i32
    %c0_i32_0 = arith.constant 0 : i32
    %c0_i32_1 = arith.constant 0 : i32
    return %c0_i32, %c0_i32_0 : i32, i32
  }
  func.func @transform_5(%arg0: i32) -> (i32, i32) {
    %c0_i32 = arith.constant 0 : i32
    %c0_i32_0 = arith.constant 0 : i32
    %c0_i32_1 = arith.constant 0 : i32
    return %c0_i32, %c0_i32_0 : i32, i32
  }
  func.func @transform_6(%arg0: i32) -> (i32, i32) {
    %c0_i32 = arith.constant 0 : i32
    %c0_i32_0 = arith.constant 0 : i32
    %c0_i32_1 = arith.constant 0 : i32
    return %c0_i32, %c0_i32_0 : i32, i32
  }
  func.func @transform_7(%arg0: i32) -> (i32, i32) {
    %c0_i32 = arith.constant 0 : i32
    %c0_i32_0 = arith.constant 0 : i32
    return %arg0, %c0_i32 : i32, i32
  }
  func.func @transform_8(%arg0: i32) -> (i32, i32) {
    %c0_i32 = arith.constant 0 : i32
    %c0_i32_0 = arith.constant 0 : i32
    return %arg0, %c0_i32 : i32, i32
  }
}

</mosaic_0001>

<bundles_post_ra>
// kernel: tpu_custom_call.1
= control target key start
LH: loop header
LB: loop body
LE: loop exit
PB: predicated region body
PF: predicated region fallthrough
CT: control target
= control target key end

     0   :  { %14 = vsyncpa [#allocation3], 0  ;;  %s754_s0 = inlined_call_operand.hbm [shape: bf16[32,32], index: 0, kind: input, shape index: {}]   ;;  %s755_s1 = inlined_call_operand.vmem [shape: f32[1,32], index: 1, kind: input, shape index: {}]   ;;  %s756_s2 = inlined_call_operand.vmem [shape: f32[1,32], index: 2, kind: input, shape index: {}]   ;;  %s757_s3 = inlined_call_operand.hbm [shape: bf16[32,48], index: 3, kind: input, shape index: {}]   ;;  %s758_s4 = inlined_call_operand.hbm [shape: bf16[32,48], index: 4, kind: input, shape index: {}]   ;;  %s759_s5 = inlined_call_operand.vmem [shape: f32[1,48], index: 5, kind: input, shape index: {}]   ;;  %s760_s6 = inlined_call_operand.vmem [shape: f32[1,48], index: 6, kind: input, shape index: {}]   ;;  %s761_s7 = inlined_call_operand.hbm [shape: bf16[32,48], index: 7, kind: output, shape index: {0}]   ;;  %s762_s8 = inlined_call_operand.hbm [shape: bf16[32,48], index: 8, kind: output, shape index: {1}]  }
   0x1   :  { %15 = vsyncpa [#allocation6], 0 }
   0x2   :  { %16 = vsyncpa [#allocation4], 0 }
   0x3   :  { %17 = vsyncpa [#allocation10], 0  ;;  %s581_s27 = smov [#allocation5]   ;;  %s582_s29 = smov [#allocation2]  }
   0x4   :  { %s39_s28 = sshll.u32 %s581_s27, 4  ;;  %s23_s30 = sshll.u32 %s582_s29, 4  ;;  %s40_s28 = int_to_ptr.vmem [resolvable:$true] %s39_s28  ;;  %s633_s30 = int_to_ptr.vmem [resolvable:$true] %s23_s30 }
   0x5   :  { %s463_s11 = scalar_lea.hbm %s757_s3, 256 }
   0x6   :  { %p464_p0 = scmp.ne.s32.totalorder %s757_s3, %s463_s11  ;;  %p467_p1 = scmp.lt.u32.totalorder %s463_s11, %s757_s3 }
   0x8   :  { %p469_p2 = pnand %p467_p1, %p464_p0 }
   0xa   :  { %472 = shalt.err (!%p469_p2)
}
   0xb   :  { %s473_s16 = scalar_lea.vmem %s40_s28, 256  ;;  %p478_p4 = scmp.lt.s32.totalorder %s40_s28, %s40_s28 }
   0xc   :  { %p474_p3 = scmp.ne.s32.totalorder %s40_s28, %s473_s16  ;;  %p479_p5 = scmp.lt.s32.totalorder %s473_s16, %s473_s16 }
   0xe   :  { %p480_p6 = por %p479_p5, %p478_p4 }
  0x10   :  { %p481_p7 = pnand %p480_p6, %p474_p3 }
  0x12   :  { %484 = shalt.err (!%p481_p7)
}
  0x13   :  { %s583_s17 = smov 64   ;;  %s584_s18 = smov 4  }
  0x14   :  { %45 = dma.hbm_to_vmem [thread:$0]  %s757_s3, 256, %s40_s28, [#allocation6], %s583_s17, %s583_s17, %s584_s18  }
  0x15   :  { %s485_s23 = scalar_lea.hbm %s754_s0, 256 }
  0x16   :  { %p486_p8 = scmp.ne.s32.totalorder %s754_s0, %s485_s23  ;;  %p489_p9 = scmp.lt.u32.totalorder %s485_s23, %s754_s0 }
  0x18   :  { %p491_p10 = pnand %p489_p9, %p486_p8 }
  0x1a   :  { %494 = shalt.err (!%p491_p10)
}
  0x1b   :  { %s495_s29 = scalar_lea.vmem %s633_s30, 256  ;;  %p500_p12 = scmp.lt.s32.totalorder %s633_s30, %s633_s30 }
  0x1c   :  { %p496_p11 = scmp.ne.s32.totalorder %s633_s30, %s495_s29  ;;  %p501_p13 = scmp.lt.s32.totalorder %s495_s29, %s495_s29 }
  0x1e   :  { %p502_p0 = por %p501_p13, %p500_p12 }
  0x20   :  { %p503_p1 = pnand %p502_p0, %p496_p11 }
  0x22   :  { %506 = shalt.err (!%p503_p1)
}
  0x23   :  { %29 = dma.hbm_to_vmem [thread:$0]  %s754_s0, 256, %s633_s30, [#allocation3], %s583_s17, %s583_s17, %s584_s18  }
  0x24   :  { %s585_s9 = smov [#allocation7]   ;;  %s507_s13 = scalar_lea.hbm %s758_s4, 256 }
  0x25   :  { %s51_s10 = sshll.u32 %s585_s9, 4  ;;  %p508_p2 = scmp.ne.s32.totalorder %s758_s4, %s507_s13  ;;  %s52_s10 = int_to_ptr.vmem [resolvable:$true] %s51_s10 }
  0x26   :  { %p511_p3 = scmp.lt.u32.totalorder %s507_s13, %s758_s4 }
  0x28   :  { %p513_p4 = pnand %p511_p3, %p508_p2 }
  0x2a   :  { %516 = shalt.err (!%p513_p4)
}
  0x2b   :  { %s517_s20 = scalar_lea.vmem %s52_s10, 256  ;;  %p522_p6 = scmp.lt.s32.totalorder %s52_s10, %s52_s10 }
  0x2c   :  { %p518_p5 = scmp.ne.s32.totalorder %s52_s10, %s517_s20  ;;  %p523_p7 = scmp.lt.s32.totalorder %s517_s20, %s517_s20 }
  0x2e   :  { %p524_p8 = por %p523_p7, %p522_p6 }
  0x30   :  { %p525_p9 = pnand %p524_p8, %p518_p5 }
  0x32   :  { %528 = shalt.err (!%p525_p9)
}
  0x33   :  { %57 = dma.hbm_to_vmem [thread:$0]  %s758_s4, 256, %s52_s10, [#allocation6], %s583_s17, %s583_s17, %s584_s18  }
  0x34   :  { %573 = dma.done.wait [#allocation3], 256  }
  0x35   :  { %574 = vsyncadd [#allocation3], 4294967040 }
  0x36   :  { %575 = dma.done.wait [#allocation6], 512  }
  0x37   :  { %576 = vsyncadd [#allocation6], 4294966784  ;;  %v412_v0 = vld [vmem:[#allocation2] sm:$0xff]   ;;  %vm80_vm0 = vcmask 261120   ;;  %v419_v1 = vld [vmem:[#allocation2 + $0x8] sm:$0xff]   ;;  %vm252_vm1 = vcmask 388096  }
  0x38   :  { %v413_v2 = vunpack.c.l.bf16 %v412_v0  ;;  %v417_v3 = vunpack.c.l.bf16 %v419_v1  ;;  %v414_v4 = vunpack.c.h.bf16 %v412_v0  ;;  %v418_v5 = vunpack.c.h.bf16 %v419_v1  ;;  %v451_v30 = vld [vmem:[#allocation5] sm:$0xff]   ;;  %v452_v31 = vld [vmem:[#allocation7] sm:$0xff]   ;;  %v453_v32 = vld [vmem:[#allocation5 + $0x8] sm:$0xff]  }
  0x39   :  { %428 = vmatprep.subr.bf16.mxu0 %v451_v30  ;;  %436 = vmatprep.subr.bf16.mxu1 %v452_v31  ;;  %v454_v33 = vld [vmem:[#allocation7 + $0x8] sm:$0xff]   ;;  %v383_v48 = vld [vmem:[%s755_s1] ss:$0 sm:$0xff] }
  0x3a   :  { %v81_v6 = vsel %vm80_vm0, %v413_v2, 0.0  ;;  %v87_v7 = vsel %vm80_vm0, %v417_v3, 0.0  ;;  %v84_v8 = vsel %vm80_vm0, %v414_v4, 0.0  ;;  %v90_v9 = vsel %vm80_vm0, %v418_v5, 0.0  ;;  %429 = vmatpush3.bf16.msra.mxu0 %v451_v30  ;;  %437 = vmatpush3.bf16.msra.mxu1 %v452_v31  ;;  %v384_v54 = vld [vmem:[%s756_s2] ss:$0 sm:$0xff] }
  0x3b   :  { %82 = vadd.xlane.f32.xlu0 %v81_v6  ;;  %88 = vadd.xlane.f32.xlu1 %v87_v7 }
  0x3c   :  { %430 = vmatprep.subr.bf16.mxu0 %v453_v32  ;;  %438 = vmatprep.subr.bf16.mxu1 %v454_v33 }
  0x3e   :  { %431 = vmatpush3.bf16.msra.mxu0 %v453_v32  ;;  %439 = vmatpush3.bf16.msra.mxu1 %v454_v33 }
  0x3f   :  { %85 = vadd.xlane.f32.xlu0 %v84_v8  ;;  %91 = vadd.xlane.f32.xlu1 %v90_v9 }
  0xc8   :  { %v83_v10 = vpop.xlane.xlu0 %82  ;;  %v89_v11 = vpop.xlane.xlu1 %88 }
  0xc9   :  { %v94_v12 = vmul.f32 0.03125, %v83_v10  ;;  %v96_v13 = vmul.f32 0.03125, %v89_v11 }
  0xcb   :  { %v98_v14 = vsub.f32 %v413_v2, %v94_v12  ;;  %v100_v15 = vsub.f32 %v417_v3, %v96_v13  ;;  %v385_v2 = vld [vmem:[%s759_s5] ss:$0 sm:$0xff]  ;;  %s586_s5 = smov [#allocation8]  }
  0xcc   :  { %v86_v16 = vpop.xlane.xlu0 %85  ;;  %v92_v17 = vpop.xlane.xlu1 %91  ;;  %v394_v3 = vld [vmem:[%s760_s6] ss:$0 sm:$0xff]  ;;  %s354_s26 = sshll.u32 %s586_s5, 4  ;;  %s587_s6 = smov [#allocation9]   ;;  %s355_s26 = int_to_ptr.vmem [resolvable:$true] %s354_s26 }
  0xcd   :  { %v95_v18 = vmul.f32 0.03125, %v86_v16  ;;  %v97_v19 = vmul.f32 0.03125, %v92_v17  ;;  %v102_v20 = vmul.f32 %v98_v14, %v98_v14  ;;  %v104_v21 = vmul.f32 %v100_v15, %v100_v15  ;;  %s366_s27 = sshll.u32 %s587_s6, 4  ;;  %s529_s29 = scalar_lea.vmem %s355_s26, 256  ;;  %s715_s27 = int_to_ptr.vmem [resolvable:$true] %s366_s27 }
  0xce   :  { %p530_p10 = scmp.ne.s32.totalorder %s355_s26, %s529_s29  ;;  %p534_p11 = scmp.lt.s32.totalorder %s355_s26, %s355_s26 }
  0xcf   :  { %v99_v22 = vsub.f32 %v414_v4, %v95_v18  ;;  %v101_v23 = vsub.f32 %v418_v5, %v97_v19  ;;  %v106_v24 = vsel %vm80_vm0, %v102_v20, 0.0  ;;  %v112_v25 = vsel %vm80_vm0, %v104_v21, 0.0  ;;  %p535_p12 = scmp.lt.s32.totalorder %s529_s29, %s529_s29 }
  0xd0   :  { %107 = vadd.xlane.f32.xlu0 %v106_v24 }
  0xd1   :  { %v103_v26 = vmul.f32 %v99_v22, %v99_v22  ;;  %v105_v27 = vmul.f32 %v101_v23, %v101_v23  ;;  %p536_p13 = por %p535_p12, %p534_p11 }
  0xd3   :  { %v109_v28 = vsel %vm80_vm0, %v103_v26, 0.0  ;;  %v115_v29 = vsel %vm80_vm0, %v105_v27, 0.0  ;;  %p537_p0 = pnand %p536_p13, %p530_p10 }
  0xd4   :  { %113 = vadd.xlane.f32.xlu0 %v112_v25  ;;  %110 = vadd.xlane.f32.xlu1 %v109_v28 }
  0xd8   :  { %116 = vadd.xlane.f32.xlu1 %v115_v29 }
 0x15d   :  { %v108_v34 = vpop.xlane.xlu0 %107 }
 0x15e   :  { %v118_v35 = vmul.f32 0.03125, %v108_v34 }
 0x160   :  { %v122_v36 = vadd.f32 1e-12, %v118_v35 }
 0x161   :  { %v111_v37 = vpop.xlane.xlu1 %110  ;;  %v114_v38 = vpop.xlane.xlu0 %113 }
 0x162   :  { %455 = vrsqrt.f32 %v122_v36  ;;  %v119_v39 = vmul.f32 0.03125, %v111_v37  ;;  %v120_v40 = vmul.f32 0.03125, %v114_v38 }
 0x164   :  { %v123_v41 = vadd.f32 1e-12, %v119_v39  ;;  %v124_v42 = vadd.f32 1e-12, %v120_v40 }
 0x165   :  { %v117_v43 = vpop.xlane.xlu1 %116 }
 0x166   :  { %457 = vrsqrt.f32 %v123_v41  ;;  %v121_v44 = vmul.f32 0.03125, %v117_v43 }
 0x167   :  { %459 = vrsqrt.f32 %v124_v42 }
 0x168   :  { %v125_v45 = vadd.f32 1e-12, %v121_v44 }
 0x16a   :  { %461 = vrsqrt.f32 %v125_v45 }
 0x16c   :  { %v456_v46 = vpop.eup %455 }
 0x16d   :  { %v130_v47 = vmul.f32 %v456_v46, %v98_v14 }
 0x16f   :  { %v141_v52 = vmul.f32 %v383_v48, %v130_v47 }
 0x170   :  { %v458_v49 = vpop.eup %457 }
 0x171   :  { %v460_v50 = vpop.eup %459  ;;  %v131_v51 = vmul.f32 %v458_v49, %v99_v22  ;;  %v152_v58 = vadd.f32 %v384_v54, %v141_v52 }
 0x172   :  { %v132_v53 = vmul.f32 %v460_v50, %v100_v15 }
 0x173   :  { %v142_v55 = vmul.f32 %v383_v48, %v131_v51 }
 0x174   :  { %v462_v56 = vpop.eup %461  ;;  %v143_v60 = vmul.f32 %v383_v48, %v132_v53 }
 0x175   :  { %v133_v57 = vmul.f32 %v462_v56, %v101_v23  ;;  %v153_v59 = vadd.f32 %v384_v54, %v142_v55 }
 0x176   :  { %v154_v63 = vadd.f32 %v384_v54, %v143_v60 }
 0x177   :  { %v156_v61 = vpack.c.bf16 %v153_v59, %v152_v58  ;;  %v144_v62 = vmul.f32 %v383_v48, %v133_v57 }
 0x179   :  { %432 = vmatprep.mubr.msk.bf16.mxu0 %vm80_vm0, %v156_v61  ;;  %440 = vmatprep.mubr.msk.bf16.mxu1 %vm80_vm0, %v156_v61  ;;  %v155_v0 = vadd.f32 %v384_v54, %v144_v62 }
 0x17b   :  { %v157_v1 = vpack.c.bf16 %v155_v0, %v154_v63 }
 0x17d   :  { %433 = vmatmul.mubr.msk.bf16.vlgmr.msra.gmra.mrb[0].mxu0 %vm80_vm0, %v157_v1  ;;  %441 = vmatmul.mubr.msk.bf16.vlgmr.msra.gmra.mrb[0].mxu1 %vm80_vm0, %v157_v1 }
 0x250   :  { %v434_v4 = vpop.f32.mrb[0].mxu0  ;;  %v442_v5 = vpop.f32.mrb[0].mxu1 }
 0x251   :  { %v230_v6 = vadd.f32 %v434_v4, %v385_v2  ;;  %v323_v7 = vadd.f32 %v442_v5, %v394_v3  ;;  %v221_v8 = vpop.f32.mrb[1].mxu0  ;;  %v314_v9 = vpop.f32.mrb[1].mxu1 }
 0x252   :  { %v222_v10 = vadd.f32 %v385_v2, %v221_v8  ;;  %v315_v11 = vadd.f32 %v394_v3, %v314_v9  ;;  %v435_v12 = vpop.f32.mrb[2].mxu0  ;;  %v443_v13 = vpop.f32.mrb[2].mxu1 }
 0x253   :  { %v405_v14 = vpack.c.bf16 %v230_v6, %v230_v6  ;;  %v409_v15 = vpack.c.bf16 %v323_v7, %v323_v7  ;;  %v233_v16 = vadd.f32 %v435_v12, %v385_v2  ;;  %v326_v17 = vadd.f32 %v443_v13, %v394_v3  ;;  %v224_v18 = vpop.f32.mrb[3].mxu0  ;;  %v317_v19 = vpop.f32.mrb[3].mxu1 }
 0x254   :  { %v403_v20 = vpack.c.bf16 %v222_v10, %v222_v10  ;;  %v407_v21 = vpack.c.bf16 %v315_v11, %v315_v11  ;;  %v225_v22 = vadd.f32 %v385_v2, %v224_v18  ;;  %v318_v23 = vadd.f32 %v394_v3, %v317_v19 }
 0x255   :  { %255 = vst.msk [vmem:[#allocation8 + $0x8] sm:$0xf] %vm252_vm1, %v405_v14  ;;  %347 = vst.msk [vmem:[#allocation9 + $0x8] sm:$0xf] %vm252_vm1, %v409_v15  ;;  %v406_v24 = vpack.c.bf16 %v233_v16, %v233_v16  ;;  %v410_v25 = vpack.c.bf16 %v326_v17, %v326_v17 }
 0x256   :  { %253 = vst.msk [vmem:[#allocation8] sm:$0xf] %vm252_vm1, %v403_v20  ;;  %345 = vst.msk [vmem:[#allocation9] sm:$0xf] %vm252_vm1, %v407_v21  ;;  %v404_v26 = vpack.c.bf16 %v225_v22, %v225_v22  ;;  %v408_v27 = vpack.c.bf16 %v318_v23, %v318_v23 }
 0x257   :  { %256 = vst.msk [vmem:[#allocation8 + $0xc] sm:$0xf] %vm252_vm1, %v406_v24  ;;  %348 = vst.msk [vmem:[#allocation9 + $0xc] sm:$0xf] %vm252_vm1, %v410_v25 }
 0x258   :  { %254 = vst.msk [vmem:[#allocation8 + $0x4] sm:$0xf] %vm252_vm1, %v404_v26  ;;  %346 = vst.msk [vmem:[#allocation9 + $0x4] sm:$0xf] %vm252_vm1, %v408_v27 }
 0x259   :  { %540 = shalt.err (!%p537_p0)
}
 0x25a   :  { %s541_s9 = scalar_lea.hbm %s761_s7, 256 }
 0x25b   :  { %p542_p1 = scmp.ne.s32.totalorder %s761_s7, %s541_s9  ;;  %p545_p2 = scmp.lt.u32.totalorder %s541_s9, %s761_s7 }
 0x25d   :  { %p547_p3 = pnand %p545_p2, %p542_p1 }
 0x25f   :  { %550 = shalt.err (!%p547_p3)
}
 0x260   :  { %360 = dma.vmem_to_hbm [thread:$0]  %s355_s26, 256, %s761_s7, [#allocation4], %s583_s17, %s583_s17, %s584_s18  }
 0x261   :  { %s551_s16 = scalar_lea.vmem %s715_s27, 256  ;;  %p556_p5 = scmp.lt.s32.totalorder %s715_s27, %s715_s27 }
 0x262   :  { %p552_p4 = scmp.ne.s32.totalorder %s715_s27, %s551_s16  ;;  %p557_p6 = scmp.lt.s32.totalorder %s551_s16, %s551_s16 }
 0x264   :  { %p558_p7 = por %p557_p6, %p556_p5 }
 0x266   :  { %p559_p8 = pnand %p558_p7, %p552_p4 }
 0x268   :  { %562 = shalt.err (!%p559_p8)
}
 0x269   :  { %s563_s0 = scalar_lea.hbm %s762_s8, 256 }
 0x26a   :  { %p564_p9 = scmp.ne.s32.totalorder %s762_s8, %s563_s0  ;;  %p567_p10 = scmp.lt.u32.totalorder %s563_s0, %s762_s8 }
 0x26c   :  { %p569_p11 = pnand %p567_p10, %p564_p9 }
 0x26e   :  { %572 = shalt.err (!%p569_p11)
}
 0x26f   :  { %372 = dma.vmem_to_hbm [thread:$0]  %s715_s27, 256, %s762_s8, [#allocation10], %s583_s17, %s583_s17, %s584_s18  }
 0x270   :  { %577 = dma.done.wait [#allocation4], 256  }
 0x271   :  { %578 = vsyncadd [#allocation4], 4294967040 }
 0x272   :  { %579 = dma.done.wait [#allocation10], 256  }
 0x273   :  { %580 = vsyncadd [#allocation10], 4294967040 }
 0x274   :  { %379 = vsyncpa [#allocation3], 1 }
 0x275   :  { %380 = vsyncpa [#allocation6], 1 }
 0x276   :  { %381 = vsyncpa [#allocation4], 1 }
 0x277   :  { %382 = vsyncpa [#allocation10], 1 }

</bundles_post_ra>
